<compile_context>
chip_gen: v7x
topology: tpu7x:2x2x1
jax: 0.10.0
libtpu: 0.0.40
codegen_flags: <defaults>
</compile_context>

<pallas_src>
import jax
import jax.numpy as jnp
from jax.experimental import pallas as pl
from jax.experimental.pallas import tpu as pltpu


_IN, _H1, _H2, _OUT = 44, 10, 10, 1


def _mlp_kernel(x_ref, w1_ref, b1_ref, w2_ref, b2_ref, w3_ref, b3_ref, o_ref):
    x = x_ref[...]                                                    # (tb, 44) f32
    # lin1: Linear(44, 10) + ReLU
    h1 = jnp.dot(x, w1_ref[...], preferred_element_type=jnp.float32) + b1_ref[...]
    h1 = jnp.maximum(h1, 0.0)
    # lin2: Linear(10, 10) + ReLU
    h2 = jnp.dot(h1, w2_ref[...], preferred_element_type=jnp.float32) + b2_ref[...]
    h2 = jnp.maximum(h2, 0.0)
    # lin3: Linear(10, 1)
    o_ref[...] = jnp.dot(h2, w3_ref[...], preferred_element_type=jnp.float32) + b3_ref[...]


def downstream_model_forward(x, params, *, tile_b=8192):
    """x: (B, 44) float32. params: dict of w1,b1,w2,b2,w3,b3. Returns (B, 1)."""
    w1, b1, w2, b2, w3, b3 = (params[k] for k in ("w1", "b1", "w2", "b2", "w3", "b3"))
    B, F = x.shape

    # Tile selection: largest multiple of 8 that is <= min(tile_b, B) so the
    # batch block dim satisfies the sublane constraint and never exceeds the
    # array extent; for B < 8 use a single full-extent block (always legal).
    if B < 8:
        tb = B
    else:
        tb = min(int(tile_b), (B // 8) * 8)
        tb = max(8, (tb // 8) * 8)

    grid = (pl.cdiv(B, tb),)                 # ragged final block handled by Pallas
    resident = lambda i: (0, 0)              # constant index_map -> weights stay in VMEM

    flops = 2 * B * (_IN * _H1 + _H1 * _H2 + _H2 * _OUT)
    weight_bytes = 4 * (_IN * _H1 + _H1 + _H1 * _H2 + _H2 + _H2 * _OUT + _OUT)
    bytes_accessed = B * F * 4 + B * _OUT * 4 + weight_bytes

    out = pl.pallas_call(
        _mlp_kernel,
        out_shape=jax.ShapeDtypeStruct((B, _OUT), jnp.float32),
        grid=grid,
        in_specs=[
            pl.BlockSpec((tb, F), lambda i: (i, 0)),      # streamed input tiles
            pl.BlockSpec(w1.shape, resident),
            pl.BlockSpec(b1.shape, resident),
            pl.BlockSpec(w2.shape, resident),
            pl.BlockSpec(b2.shape, resident),
            pl.BlockSpec(w3.shape, resident),
            pl.BlockSpec(b3.shape, resident),
        ],
        out_specs=pl.BlockSpec((tb, _OUT), lambda i: (i, 0)),
        compiler_params=pltpu.CompilerParams(
            dimension_semantics=("parallel",),            # megacore-shard batch on v7x
            vmem_limit_bytes=48 << 20,                    # lane-padded tb*128*4 B tiles
        ),
        cost_estimate=pl.CostEstimate(
            flops=flops, transcendentals=0, bytes_accessed=bytes_accessed),
    )(x, w1, b1, w2, b2, w3, b3)

    return out


def init_params(key):
    """Deterministic init matching the PyTorch module's parameter shapes.

    torch.nn.Linear(in, out) has weight (out, in) and bias (out,); here we store
    the transposed weight (in, out) for x @ W, and biases as (1, out) rows.
    Init mimics PyTorch's default uniform(-1/sqrt(in), 1/sqrt(in)).
    """
    keys = jax.random.split(key, 6)

    def linear(kw, kb, fan_in, fan_out):
        bound = 1.0 / jnp.sqrt(jnp.float32(fan_in))
        w = jax.random.uniform(kw, (fan_in, fan_out), jnp.float32, -bound, bound)
        b = jax.random.uniform(kb, (1, fan_out), jnp.float32, -bound, bound)
        return w, b

    w1, b1 = linear(keys[0], keys[1], _IN, _H1)
    w2, b2 = linear(keys[2], keys[3], _H1, _H2)
    w3, b3 = linear(keys[4], keys[5], _H2, _OUT)
    return {"w1": w1, "b1": b1, "w2": w2, "b2": b2, "w3": w3, "b3": b3}


def _reference_forward(x, p):
    h1 = jnp.maximum(x @ p["w1"] + p["b1"], 0.0)
    h2 = jnp.maximum(h1 @ p["w2"] + p["b2"], 0.0)
    return h2 @ p["w3"] + p["b3"]


if __name__ == "__main__":
    key = jax.random.PRNGKey(0)
    k_params, k_x1, k_x2, k_x3 = jax.random.split(key, 4)

    params = init_params(k_params)

    # Small primary check: batch=8, features=44 (single tile, exact fit).
    x_small = jax.random.normal(k_x1, (8, _IN), dtype=jnp.float32)
    out_small = jax.block_until_ready(downstream_model_forward(x_small, params))
    ref_small = _reference_forward(x_small, params)
    assert out_small.shape == (8, 1), out_small.shape
    assert jnp.allclose(out_small, ref_small, atol=1e-5, rtol=1e-5), "mismatch (small batch)"

    # Ragged-tail check (B % tb != 0, multi-step grid) with a small tile so the
    # padless ragged-final-block path is validated explicitly.
    x_tail = jax.random.normal(k_x2, (133, _IN), dtype=jnp.float32)
    out_tail = jax.block_until_ready(downstream_model_forward(x_tail, params, tile_b=64))
    ref_tail = _reference_forward(x_tail, params)
    assert out_tail.shape == (133, 1), out_tail.shape
    assert jnp.allclose(out_tail, ref_tail, atol=1e-5, rtol=1e-5), "mismatch (ragged tail)"

    # Default-tile path: large-ish ragged batch through the tb=8192 streaming
    # configuration (grid > 1, ragged final block, no wrapper-side pad).
    x_big = jax.random.normal(k_x3, (9000, _IN), dtype=jnp.float32)
    out_big = jax.block_until_ready(downstream_model_forward(x_big, params))
    ref_big = _reference_forward(x_big, params)
    assert out_big.shape == (9000, 1), out_big.shape
    assert jnp.allclose(out_big, ref_big, atol=1e-4, rtol=1e-4), "mismatch (default tile)"

    print("KERNEL_OK")
</pallas_src>

<mosaic_0001>
module attributes {stable_mosaic.version = 11 : i64} {
  func.func @_mlp_kernel(%arg0: i32, %arg1: memref<8x44xf32, #tpu.memory_space<vmem>>, %arg2: memref<44x10xf32, #tpu.memory_space<vmem>>, %arg3: memref<1x10xf32, #tpu.memory_space<vmem>>, %arg4: memref<10x10xf32, #tpu.memory_space<vmem>>, %arg5: memref<1x10xf32, #tpu.memory_space<vmem>>, %arg6: memref<10x1xf32, #tpu.memory_space<vmem>>, %arg7: memref<1x1xf32, #tpu.memory_space<vmem>>, %arg8: memref<8x1xf32, #tpu.memory_space<vmem>>) attributes {dimension_semantics = [#tpu.dimension_semantics<parallel>], iteration_bounds = array<i64: 1>, scalar_prefetch = 0 : i64, scratch_operands = 0 : i64, tpu.core_type = #tpu.core_type<tc>, window_params = [{transform_indices = @transform_0, window_bounds = array<i64: 8, 44>}, {pipeline_mode = #tpu.pipeline_mode<synchronous>, transform_indices = @transform_1, window_bounds = array<i64: 44, 10>}, {pipeline_mode = #tpu.pipeline_mode<synchronous>, transform_indices = @transform_2, window_bounds = array<i64: 1, 10>}, {pipeline_mode = #tpu.pipeline_mode<synchronous>, transform_indices = @transform_3, window_bounds = array<i64: 10, 10>}, {pipeline_mode = #tpu.pipeline_mode<synchronous>, transform_indices = @transform_4, window_bounds = array<i64: 1, 10>}, {pipeline_mode = #tpu.pipeline_mode<synchronous>, transform_indices = @transform_5, window_bounds = array<i64: 10, 1>}, {pipeline_mode = #tpu.pipeline_mode<synchronous>, transform_indices = @transform_6, window_bounds = array<i64: 1, 1>}, {transform_indices = @transform_7, window_bounds = array<i64: 8, 1>}]} {
    %c0 = arith.constant 0 : index
    %c0_0 = arith.constant 0 : index
    %0 = vector.load %arg1[%c0, %c0_0] : memref<8x44xf32, #tpu.memory_space<vmem>>, vector<8x44xf32>
    %c0_1 = arith.constant 0 : index
    %c0_2 = arith.constant 0 : index
    %1 = vector.load %arg2[%c0_1, %c0_2] : memref<44x10xf32, #tpu.memory_space<vmem>>, vector<44x10xf32>
    %cst = arith.constant dense<0.000000e+00> : vector<8x10xf32>
    %2 = tpu.matmul %0, %1, %cst {dimension_numbers = #tpu.dot_dimension_numbers<[1], [0], [0], [1], [0, 0, 1, 1], [], []>} : vector<8x44xf32>, vector<44x10xf32>, vector<8x10xf32> -> vector<8x10xf32>
    %c0_3 = arith.constant 0 : index
    %c0_4 = arith.constant 0 : index
    %3 = vector.load %arg3[%c0_3, %c0_4] : memref<1x10xf32, #tpu.memory_space<vmem>>, vector<1x10xf32>
    %4 = vector.broadcast %3 : vector<1x10xf32> to vector<8x10xf32>
    %5 = arith.addf %2, %4 : vector<8x10xf32>
    %cst_5 = arith.constant 0.000000e+00 : f32
    %6 = vector.broadcast %cst_5 : f32 to vector<8x10xf32>
    %7 = arith.maximumf %5, %6 : vector<8x10xf32>
    %c0_6 = arith.constant 0 : index
    %c0_7 = arith.constant 0 : index
    %8 = vector.load %arg4[%c0_6, %c0_7] : memref<10x10xf32, #tpu.memory_space<vmem>>, vector<10x10xf32>
    %cst_8 = arith.constant dense<0.000000e+00> : vector<8x10xf32>
    %9 = tpu.matmul %7, %8, %cst_8 {dimension_numbers = #tpu.dot_dimension_numbers<[1], [0], [0], [1], [0, 0, 1, 1], [], []>} : vector<8x10xf32>, vector<10x10xf32>, vector<8x10xf32> -> vector<8x10xf32>
    %c0_9 = arith.constant 0 : index
    %c0_10 = arith.constant 0 : index
    %10 = vector.load %arg5[%c0_9, %c0_10] : memref<1x10xf32, #tpu.memory_space<vmem>>, vector<1x10xf32>
    %11 = vector.broadcast %10 : vector<1x10xf32> to vector<8x10xf32>
    %12 = arith.addf %9, %11 : vector<8x10xf32>
    %cst_11 = arith.constant 0.000000e+00 : f32
    %13 = vector.broadcast %cst_11 : f32 to vector<8x10xf32>
    %14 = arith.maximumf %12, %13 : vector<8x10xf32>
    %c0_12 = arith.constant 0 : index
    %c0_13 = arith.constant 0 : index
    %15 = vector.load %arg6[%c0_12, %c0_13] : memref<10x1xf32, #tpu.memory_space<vmem>>, vector<10x1xf32>
    %cst_14 = arith.constant dense<0.000000e+00> : vector<8x1xf32>
    %16 = tpu.matmul %14, %15, %cst_14 {dimension_numbers = #tpu.dot_dimension_numbers<[1], [0], [0], [1], [0, 0, 1, 1], [], []>} : vector<8x10xf32>, vector<10x1xf32>, vector<8x1xf32> -> vector<8x1xf32>
    %c0_15 = arith.constant 0 : index
    %c0_16 = arith.constant 0 : index
    %17 = vector.load %arg7[%c0_15, %c0_16] : memref<1x1xf32, #tpu.memory_space<vmem>>, vector<1x1xf32>
    %18 = vector.broadcast %17 : vector<1x1xf32> to vector<8x1xf32>
    %19 = arith.addf %16, %18 : vector<8x1xf32>
    %c0_17 = arith.constant 0 : index
    %c0_18 = arith.constant 0 : index
    %20 = vector.load %arg8[%c0_17, %c0_18] : memref<8x1xf32, #tpu.memory_space<vmem>>, vector<8x1xf32>
    tpu.vector_store %arg8[%c0_17, %c0_18], %19 {strides = array<i32>} : memref<8x1xf32, #tpu.memory_space<vmem>>, vector<8x1xf32>,
    return
  }
  func.func @transform_0(%arg0: i32) -> (i32, i32) {
    %c0_i32 = arith.constant 0 : i32
    %c0_i32_0 = arith.constant 0 : i32
    return %arg0, %c0_i32 : i32, i32
  }
  func.func @transform_1(%arg0: i32) -> (i32, i32) {
    %c0_i32 = arith.constant 0 : i32
    %c0_i32_0 = arith.constant 0 : i32
    %c0_i32_1 = arith.constant 0 : i32
    return %c0_i32, %c0_i32_0 : i32, i32
  }
  func.func @transform_2(%arg0: i32) -> (i32, i32) {
    %c0_i32 = arith.constant 0 : i32
    %c0_i32_0 = arith.constant 0 : i32
    %c0_i32_1 = arith.constant 0 : i32
    return %c0_i32, %c0_i32_0 : i32, i32
  }
  func.func @transform_3(%arg0: i32) -> (i32, i32) {
    %c0_i32 = arith.constant 0 : i32
    %c0_i32_0 = arith.constant 0 : i32
    %c0_i32_1 = arith.constant 0 : i32
    return %c0_i32, %c0_i32_0 : i32, i32
  }
  func.func @transform_4(%arg0: i32) -> (i32, i32) {
    %c0_i32 = arith.constant 0 : i32
    %c0_i32_0 = arith.constant 0 : i32
    %c0_i32_1 = arith.constant 0 : i32
    return %c0_i32, %c0_i32_0 : i32, i32
  }
  func.func @transform_5(%arg0: i32) -> (i32, i32) {
    %c0_i32 = arith.constant 0 : i32
    %c0_i32_0 = arith.constant 0 : i32
    %c0_i32_1 = arith.constant 0 : i32
    return %c0_i32, %c0_i32_0 : i32, i32
  }
  func.func @transform_6(%arg0: i32) -> (i32, i32) {
    %c0_i32 = arith.constant 0 : i32
    %c0_i32_0 = arith.constant 0 : i32
    %c0_i32_1 = arith.constant 0 : i32
    return %c0_i32, %c0_i32_0 : i32, i32
  }
  func.func @transform_7(%arg0: i32) -> (i32, i32) {
    %c0_i32 = arith.constant 0 : i32
    %c0_i32_0 = arith.constant 0 : i32
    return %arg0, %c0_i32 : i32, i32
  }
}

</mosaic_0001>

<bundles_post_ra>
// kernel: tpu_custom_call.1
= control target key start
LH: loop header
LB: loop body
LE: loop exit
PB: predicated region body
PF: predicated region fallthrough
CT: control target
= control target key end

     0   :  { %v373_v0 = vmov 0.0|0.0   ;;  %vm374_vm0 = vmmov 0   ;;  %v375_v6 = vmov 0.0   ;;  %vm46_vm1 = vcmask 1043456   ;;  %s475_s1 = inlined_call_operand.vmem [shape: f32[44,10], index: 1, kind: input, shape index: {}]   ;;  %s476_s0 = inlined_call_operand.vmem [shape: f32[8,44], index: 0, kind: input, shape index: {}]   ;;  %s477_s3 = inlined_call_operand.vmem [shape: f32[10,10], index: 3, kind: input, shape index: {}]   ;;  %s478_s2 = inlined_call_operand.vmem [shape: f32[1,10], index: 2, kind: input, shape index: {}]   ;;  %s479_s5 = inlined_call_operand.vmem [shape: f32[10,1], index: 5, kind: input, shape index: {}]   ;;  %s480_s6 = inlined_call_operand.<no memory space> [shape: f32[1,1], index: 6, kind: input, shape index: {}]   ;;  %s481_s4 = inlined_call_operand.vmem [shape: f32[1,10], index: 4, kind: input, shape index: {}]   ;;  %s482_s7 = inlined_call_operand.vmem [shape: f32[8,1], index: 7, kind: output, shape index: {}]  }
   0x1   :  { %351 = vmatprep.subr.bf16.mxu0 %v373_v0  ;;  %v29_v1 = vld [vmem:[%s475_s1] sm:$0xff]  ;;  %v30_v2 = vld [vmem:[%s475_s1 + $0x8] sm:$0xff]  ;;  %v31_v3 = vld [vmem:[%s475_s1 + $0x10] sm:$0xff]  ;;  %361 = vmatprep.subr.bf16.mxu1 %v373_v0  ;;  %vm376_vm2 = vmmov 1   ;;  %vm42_vm4 = vcmask 359424   ;;  %vm134_vm5 = vcmask 1041408   ;;  %v12_v24 = vstv %s480_s6 }
   0x2   :  { %v352_v4 = vpack.c.bf16 %v30_v2, %v29_v1  ;;  %v32_v5 = vld [vmem:[%s475_s1 + $0x18] sm:$0xff]  ;;  %334 = vmatprep.mubr.msk.f32.mxu0 %vm374_vm0, %v375_v6  ;;  %341 = vmatprep.mubr.msk.f32.mxu1 %vm374_vm0, %v375_v6  ;;  %v33_v8 = vld [vmem:[%s475_s1 + $0x20] sm:$0xff]  ;;  %v34_v9 = vld [vmem:[%s475_s1 + $0x28] sm:$0xf]  ;;  %vm130_vm7 = vcmask 80896   ;;  %vm294_vm8 = vcmask 7168  }
   0x3   :  { %v355_v7 = vpack.c.bf16 %v32_v5, %v31_v3  ;;  %v358_v10 = vpack.c.bf16 %v34_v9, %v33_v8  ;;  %vm359_vm3 = vmpackc.low %vm46_vm1, %vm376_vm2  ;;  %v28_v11 = vld [vmem:[%s476_s0] sm:$0xff]  ;;  %v122_v13 = vld [vmem:[%s477_s3 + $0x8] sm:$0x3]  ;;  %13 = vst [vmem:[#allocation2] sm:$0x1] %v12_v24 }
   0x4   :  { %353 = vmatpush3.bf16.msra.mxu0 %v352_v4  ;;  %v121_v12 = vld [vmem:[%s477_s3] sm:$0xff]  ;;  %vm446_vm6 = vmpackc.low %vm134_vm5, %vm376_vm2  ;;  %v210_v22 = vld [vmem:[%s479_s5 + $0x8] sm:$0x3] }
   0x5   :  { %354 = vmatprep.subr.bf16.mxu0 %v373_v0  ;;  %v362_v14 = vpack.c.bf16 %v122_v13, %v121_v12  ;;  %v300_v16 = vld [vmem:[%s478_s2] ss:$0 sm:$0xff] }
   0x6   :  { %v209_v21 = vld [vmem:[%s479_s5] sm:$0xff] }
   0x7   :  { %364 = vmatpush3.bf16.msk.msra.mxu1 %vm446_vm6, %v362_v14  ;;  %v366_v23 = vpack.c.bf16 %v210_v22, %v209_v21  ;;  %v303_v25 = vld [vmem:[%s481_s4] ss:$0 sm:$0xff] }
   0x8   :  { %356 = vmatpush3.bf16.msra.mxu0 %v355_v7  ;;  %365 = vmatprep.subr.bf16.mxu1 %v373_v0 }
   0x9   :  { %357 = vmatprep.subr.bf16.mxu0 %v373_v0 }
   0xa   :  { %v306_v30 = vld [vmem:[#allocation2] ss:$0 sm:$0xff] }
   0xc   :  { %360 = vmatpush3.bf16.msk.msra.mxu0 %vm359_vm3, %v358_v10 }
   0xf   :  { %335 = vmatmul.mubr.msk.f32.vlgmr.msra.gmra.mrb[0].mxu0 %vm42_vm4, %v28_v11 }
  0xe2   :  { %v116_v17 = vpop.f32.mrb[0].mxu0 }
  0xe3   :  { %v117_v18 = vadd.f32 %v300_v16, %v116_v17  ;;  %v336_v19 = vpop.f32.mrb[1].mxu0 }
  0xe5   :  { %v120_v20 = vmax.f32 %v117_v18, 0.0 }
  0xe7   :  { %342 = vmatmul.mubr.msk.f32.vlgmr.msra.gmra.mrb[0].mxu1 %vm130_vm7, %v120_v20 }
  0xe8   :  { %348 = vmatprep.mubr.msk.f32.mxu1 %vm374_vm0, %v375_v6  ;;  %368 = vmatpush3.bf16.msk.msra.mxu1 %vm446_vm6, %v366_v23 }
 0x1ba   :  { %v204_v26 = vpop.f32.mrb[0].mxu1 }
 0x1bb   :  { %v205_v27 = vadd.f32 %v303_v25, %v204_v26  ;;  %v343_v28 = vpop.f32.mrb[1].mxu1 }
 0x1bd   :  { %v208_v29 = vmax.f32 %v205_v27, 0.0 }
 0x1bf   :  { %349 = vmatmul.mubr.msk.f32.vlgmr.msra.gmra.mrb[2].mxu1 %vm130_vm7, %v208_v29 }
 0x292   :  { %v290_v31 = vpop.f32.mrb[2].mxu1 }
 0x293   :  { %v291_v32 = vadd.f32 %v306_v30, %v290_v31  ;;  %v350_v33 = vpop.f32.mrb[3].mxu1 }
 0x295   :  { %295 = vst.msk [vmem:[%s482_s7] sm:$0xff] %vm294_vm8, %v291_v32 }

</bundles_post_ra>
